<compile_context>
chip_gen: v7x
topology: tpu7x:2x2x1
jax: 0.10.0
libtpu: 0.0.40
codegen_flags: <defaults>
</compile_context>

<pallas_src>
import jax
import jax.numpy as jnp
from jax.experimental import pallas as pl
from jax.experimental.pallas import tpu as pltpu

LANE = 128
# Max rows per activation tile. Do NOT raise past ~2048 without also raising
# vmem_limit_bytes and re-checking the per-core VMEM sum on v7x.
MAX_TM = 1024


def _round_up(x, m):
    return ((x + m - 1) // m) * m


def conv1x1_kernel(x_ref, w_ref, b_ref, o_ref):
    # x_ref: (TM, Cin), w_ref: (Cin, Cout'), b_ref: (1, Cout'), o_ref: (TM, Cout')
    acc = jnp.dot(x_ref[...], w_ref[...], preferred_element_type=jnp.float32)
    o_ref[...] = (acc + b_ref[...]).astype(o_ref.dtype)


def prepare_conv1x1_params(weight, bias, *, pad_cout_to_lane=False,
                           param_dtype=None):
    """One-time parameter prep (off the per-call critical path).

    weight: (Cout, Cin, 1, 1) PyTorch layout, bias: (Cout,)
    returns (w_2d (Cin, Cout'), b_2d (1, Cout')), where Cout' is Cout or, if
    pad_cout_to_lane, Cout rounded up to a 128-lane multiple.
    """
    cout, cin = weight.shape[0], weight.shape[1]
    w_2d = jnp.transpose(weight.reshape(cout, cin))              # (Cin, Cout)
    if param_dtype is not None:                                  # opt-in bf16
        w_2d = w_2d.astype(param_dtype)
    b_2d = bias.reshape(1, cout).astype(jnp.float32)             # f32 bias add
    if pad_cout_to_lane:
        cout_pad = _round_up(cout, LANE)
        w_2d = jnp.pad(w_2d, ((0, 0), (0, cout_pad - cout)))
        b_2d = jnp.pad(b_2d, ((0, 0), (0, cout_pad - cout)))
    return w_2d, b_2d


def conv2d_1x1(x_nchw, w_2d, b_2d, cout):
    """1x1 conv, stride 1, no padding: (N, Cin, H, W) -> (N, Cout, H, W)."""
    N, Cin, H, W = x_nchw.shape
    cout_pad = w_2d.shape[1]
    M = N * H * W

    # NCHW -> (M, Cin). For H == W == 1 this is a pure reshape (no HBM pass).
    if H == 1 and W == 1:
        x_2d = x_nchw.reshape(N, Cin)
    else:
        x_2d = jnp.transpose(x_nchw, (0, 2, 3, 1)).reshape(M, Cin)

    if x_2d.dtype != w_2d.dtype:        # only on the opt-in bf16 path
        x_2d = x_2d.astype(w_2d.dtype)

    # Tile M without padding the activation in HBM:
    #   * M <= MAX_TM: one full-dim block (legal regardless of (8,128) rule).
    #   * M >  MAX_TM: 8-divisible 1024-row tiles; Pallas clips the ragged
    #     tail block's input DMA and output writeback, so no wasted traffic.
    TM = M if M <= MAX_TM else MAX_TM
    grid = (pl.cdiv(M, TM),)

    out_2d = pl.pallas_call(
        conv1x1_kernel,
        out_shape=jax.ShapeDtypeStruct((M, cout_pad), x_nchw.dtype),
        grid=grid,
        in_specs=[
            pl.BlockSpec((TM, Cin), lambda i: (i, 0)),
            pl.BlockSpec((Cin, cout_pad), lambda i: (0, 0)),   # resident weight
            pl.BlockSpec((1, cout_pad), lambda i: (0, 0)),     # resident bias
        ],
        out_specs=pl.BlockSpec((TM, cout_pad), lambda i: (i, 0)),
        compiler_params=pltpu.CompilerParams(
            dimension_semantics=("parallel",),   # v7x megacore sharding
        ),
    )(x_2d, w_2d, b_2d)

    if cout_pad != cout:                 # only if lane padding was requested
        out_2d = out_2d[:, :cout]

    if H == 1 and W == 1:
        return out_2d.reshape(N, cout, 1, 1)
    return jnp.transpose(out_2d.reshape(N, H, W, cout), (0, 3, 1, 2))


if __name__ == "__main__":
    key = jax.random.PRNGKey(0)
    k_x, k_w, k_b = jax.random.split(key, 3)

    N, Cin, H, W = 1, 960, 1, 1
    Cout = 40

    # Input matching the module: torch.randn([1, 960, 1, 1])
    x = jax.random.normal(k_x, (N, Cin, H, W), dtype=jnp.float32)

    # Deterministic parameter init (PyTorch-like uniform bounds for Conv2d)
    fan_in = Cin * 1 * 1
    bound = 1.0 / (fan_in ** 0.5)
    weight = jax.random.uniform(k_w, (Cout, Cin, 1, 1),
                                minval=-bound, maxval=bound, dtype=jnp.float32)
    bias = jax.random.uniform(k_b, (Cout,),
                              minval=-bound, maxval=bound, dtype=jnp.float32)

    # One-time parameter prep (transpose only; no lane padding on the small-M
    # latency path -> minimal per-call weight DMA).
    w_2d, b_2d = prepare_conv1x1_params(weight, bias, pad_cout_to_lane=False)
    w_2d = jax.block_until_ready(w_2d)
    b_2d = jax.block_until_ready(b_2d)

    out = conv2d_1x1(x, w_2d, b_2d, Cout)
    out = jax.block_until_ready(out)

    # Sanity check vs plain-JAX reference
    ref = jnp.einsum('nchw,oc->nohw', x, weight.reshape(Cout, Cin)) \
        + bias.reshape(1, Cout, 1, 1)
    assert out.shape == (N, Cout, H, W)
    assert jnp.allclose(out, ref, atol=1e-5, rtol=1e-5)

    print("KERNEL_OK")
</pallas_src>

<mosaic_0001>
module attributes {stable_mosaic.version = 11 : i64} {
  func.func @conv1x1_kernel(%arg0: i32, %arg1: memref<1x960xf32, #tpu.memory_space<vmem>>, %arg2: memref<960x40xf32, #tpu.memory_space<vmem>>, %arg3: memref<1x40xf32, #tpu.memory_space<vmem>>, %arg4: memref<1x40xf32, #tpu.memory_space<vmem>>) attributes {dimension_semantics = [#tpu.dimension_semantics<parallel>], iteration_bounds = array<i64: 1>, scalar_prefetch = 0 : i64, scratch_operands = 0 : i64, tpu.core_type = #tpu.core_type<tc>, window_params = [{transform_indices = @transform_0, window_bounds = array<i64: 1, 960>}, {pipeline_mode = #tpu.pipeline_mode<synchronous>, transform_indices = @transform_1, window_bounds = array<i64: 960, 40>}, {pipeline_mode = #tpu.pipeline_mode<synchronous>, transform_indices = @transform_2, window_bounds = array<i64: 1, 40>}, {transform_indices = @transform_3, window_bounds = array<i64: 1, 40>}]} {
    %c0 = arith.constant 0 : index
    %c0_0 = arith.constant 0 : index
    %0 = vector.load %arg1[%c0, %c0_0] : memref<1x960xf32, #tpu.memory_space<vmem>>, vector<1x960xf32>
    %c0_1 = arith.constant 0 : index
    %c0_2 = arith.constant 0 : index
    %1 = vector.load %arg2[%c0_1, %c0_2] : memref<960x40xf32, #tpu.memory_space<vmem>>, vector<960x40xf32>
    %cst = arith.constant dense<0.000000e+00> : vector<1x40xf32>
    %2 = tpu.matmul %0, %1, %cst {dimension_numbers = #tpu.dot_dimension_numbers<[1], [0], [0], [1], [0, 0, 1, 1], [], []>} : vector<1x960xf32>, vector<960x40xf32>, vector<1x40xf32> -> vector<1x40xf32>
    %c0_3 = arith.constant 0 : index
    %c0_4 = arith.constant 0 : index
    %3 = vector.load %arg3[%c0_3, %c0_4] : memref<1x40xf32, #tpu.memory_space<vmem>>, vector<1x40xf32>
    %4 = arith.addf %2, %3 : vector<1x40xf32>
    %c0_5 = arith.constant 0 : index
    %c0_6 = arith.constant 0 : index
    %5 = vector.load %arg4[%c0_5, %c0_6] : memref<1x40xf32, #tpu.memory_space<vmem>>, vector<1x40xf32>
    tpu.vector_store %arg4[%c0_5, %c0_6], %4 {strides = array<i32>} : memref<1x40xf32, #tpu.memory_space<vmem>>, vector<1x40xf32>,
    return
  }
  func.func @transform_0(%arg0: i32) -> (i32, i32) {
    %c0_i32 = arith.constant 0 : i32
    %c0_i32_0 = arith.constant 0 : i32
    return %arg0, %c0_i32 : i32, i32
  }
  func.func @transform_1(%arg0: i32) -> (i32, i32) {
    %c0_i32 = arith.constant 0 : i32
    %c0_i32_0 = arith.constant 0 : i32
    %c0_i32_1 = arith.constant 0 : i32
    return %c0_i32, %c0_i32_0 : i32, i32
  }
  func.func @transform_2(%arg0: i32) -> (i32, i32) {
    %c0_i32 = arith.constant 0 : i32
    %c0_i32_0 = arith.constant 0 : i32
    %c0_i32_1 = arith.constant 0 : i32
    return %c0_i32, %c0_i32_0 : i32, i32
  }
  func.func @transform_3(%arg0: i32) -> (i32, i32) {
    %c0_i32 = arith.constant 0 : i32
    %c0_i32_0 = arith.constant 0 : i32
    return %arg0, %c0_i32 : i32, i32
  }
}

</mosaic_0001>

<bundles_post_ra>
// kernel: tpu_custom_call.1
= control target key start
LH: loop header
LB: loop body
LE: loop exit
PB: predicated region body
PF: predicated region fallthrough
CT: control target
= control target key end

     0   :  { %v138_v47 = vlaneseq  ;;  %vm177_vm0 = vcmask 523264   ;;  %s1172_s0 = inlined_call_operand.vmem [shape: f32[1,960], index: 0, kind: input, shape index: {}]   ;;  %s1173_s1 = inlined_call_operand.vmem [shape: f32[960,40], index: 1, kind: input, shape index: {}]   ;;  %s1174_s2 = inlined_call_operand.vmem [shape: f32[1,40], index: 2, kind: input, shape index: {}]   ;;  %s1175_s3 = inlined_call_operand.hbm [shape: f32[1,40], index: 3, kind: output, shape index: {}]  }
   0x1   :  { %v32_v0 = vld [vmem:[%s1173_s1 + $0x80] sm:$0xff]  ;;  %v33_v1 = vld [vmem:[%s1173_s1 + $0x88] sm:$0xff]  ;;  %v34_v11 = vld [vmem:[%s1173_s1 + $0x90] sm:$0xff] }
   0x2   :  { %v64_v2 = vld [vmem:[%s1173_s1 + $0x180] sm:$0xff]  ;;  %v582_v3 = vpack.c.bf16 %v33_v1, %v32_v0  ;;  %v65_v4 = vld [vmem:[%s1173_s1 + $0x188] sm:$0xff]  ;;  %v35_v13 = vld [vmem:[%s1173_s1 + $0x98] sm:$0xff]  ;;  %v888_v61 = vshrl.u32 %v138_v47, 7 }
   0x3   :  { %v16_v5 = vld [vmem:[%s1173_s1] sm:$0xff]  ;;  %v17_v6 = vld [vmem:[%s1173_s1 + $0x8] sm:$0xff]  ;;  %v614_v7 = vpack.c.bf16 %v65_v4, %v64_v2  ;;  %v66_v14 = vld [vmem:[%s1173_s1 + $0x190] sm:$0xff]  ;;  %v586_v16 = vpack.c.bf16 %v35_v13, %v34_v11 }
   0x4   :  { %v584_v8 = vpack.c.bf16 %v17_v6, %v16_v5  ;;  %v48_v9 = vld [vmem:[%s1173_s1 + $0x100] sm:$0xff]  ;;  %v49_v10 = vld [vmem:[%s1173_s1 + $0x108] sm:$0xff]  ;;  %583 = vmatprep.subr.bf16.mxu0 %v582_v3  ;;  %v67_v15 = vld [vmem:[%s1173_s1 + $0x198] sm:$0xff]  ;;  %v152_v11 = vsub.s32 3, %v888_v61 }
   0x5   :  { %v616_v12 = vpack.c.bf16 %v49_v10, %v48_v9  ;;  %615 = vmatprep.subr.bf16.mxu1 %v614_v7  ;;  %v618_v17 = vpack.c.bf16 %v67_v15, %v66_v14  ;;  %v18_v18 = vld [vmem:[%s1173_s1 + $0x10] sm:$0xff]  ;;  %v19_v19 = vld [vmem:[%s1173_s1 + $0x18] sm:$0xff]  ;;  %v36_v23 = vld [vmem:[%s1173_s1 + $0xa0] sm:$0xff]  ;;  %v144_v10 = vsub.s32 1, %v888_v61 }
   0x6   :  { %585 = vmatpush3.bf16.msra.mxu0 %v584_v8  ;;  %v50_v20 = vld [vmem:[%s1173_s1 + $0x110] sm:$0xff]  ;;  %v588_v21 = vpack.c.bf16 %v19_v19, %v18_v18  ;;  %v51_v22 = vld [vmem:[%s1173_s1 + $0x118] sm:$0xff]  ;;  %v37_v24 = vld [vmem:[%s1173_s1 + $0xa8] sm:$0xff] }
   0x7   :  { %617 = vmatpush3.bf16.msra.mxu1 %v616_v12  ;;  %587 = vmatprep.subr.bf16.mxu0 %v586_v16  ;;  %v620_v25 = vpack.c.bf16 %v51_v22, %v50_v20  ;;  %v590_v26 = vpack.c.bf16 %v37_v24, %v36_v23  ;;  %v68_v27 = vld [vmem:[%s1173_s1 + $0x1a0] sm:$0xff]  ;;  %v69_v28 = vld [vmem:[%s1173_s1 + $0x1a8] sm:$0xff]  ;;  %v38_v35 = vld [vmem:[%s1173_s1 + $0xb0] sm:$0xff] }
   0x8   :  { %619 = vmatprep.subr.bf16.mxu1 %v618_v17  ;;  %v20_v29 = vld [vmem:[%s1173_s1 + $0x20] sm:$0xff]  ;;  %v622_v30 = vpack.c.bf16 %v69_v28, %v68_v27  ;;  %v21_v31 = vld [vmem:[%s1173_s1 + $0x28] sm:$0xff]  ;;  %v39_v36 = vld [vmem:[%s1173_s1 + $0xb8] sm:$0xff] }
   0x9   :  { %v52_v32 = vld [vmem:[%s1173_s1 + $0x120] sm:$0xff]  ;;  %v53_v33 = vld [vmem:[%s1173_s1 + $0x128] sm:$0xff]  ;;  %v592_v34 = vpack.c.bf16 %v21_v31, %v20_v29  ;;  %v70_v37 = vld [vmem:[%s1173_s1 + $0x1b0] sm:$0xff]  ;;  %v594_v39 = vpack.c.bf16 %v39_v36, %v38_v35 }
   0xa   :  { %589 = vmatpush3.bf16.msra.mxu0 %v588_v21  ;;  %v624_v38 = vpack.c.bf16 %v53_v33, %v52_v32  ;;  %v71_v40 = vld [vmem:[%s1173_s1 + $0x1b8] sm:$0xff]  ;;  %v22_v41 = vld [vmem:[%s1173_s1 + $0x30] sm:$0xff]  ;;  %v40_v46 = vld [vmem:[%s1173_s1 + $0xc0] sm:$0xff] }
   0xb   :  { %621 = vmatpush3.bf16.msra.mxu1 %v620_v25  ;;  %591 = vmatprep.subr.bf16.mxu0 %v590_v26  ;;  %v23_v42 = vld [vmem:[%s1173_s1 + $0x38] sm:$0xff]  ;;  %v626_v43 = vpack.c.bf16 %v71_v40, %v70_v37  ;;  %v54_v44 = vld [vmem:[%s1173_s1 + $0x130] sm:$0xff]  ;;  %v41_v48 = vld [vmem:[%s1173_s1 + $0xc8] sm:$0xff] }
   0xc   :  { %623 = vmatprep.subr.bf16.mxu1 %v622_v30  ;;  %v55_v45 = vld [vmem:[%s1173_s1 + $0x138] sm:$0xff]  ;;  %v72_v49 = vld [vmem:[%s1173_s1 + $0x1c0] sm:$0xff]  ;;  %v73_v50 = vld [vmem:[%s1173_s1 + $0x1c8] sm:$0xff]  ;;  %v596_v51 = vpack.c.bf16 %v23_v42, %v22_v41  ;;  %v598_v53 = vpack.c.bf16 %v41_v48, %v40_v46  ;;  %v148_v41 = vsub.s32 2, %v888_v61 }
   0xd   :  { %v628_v52 = vpack.c.bf16 %v55_v45, %v54_v44  ;;  %v24_v54 = vld [vmem:[%s1173_s1 + $0x40] sm:$0xff]  ;;  %v25_v55 = vld [vmem:[%s1173_s1 + $0x48] sm:$0xff]  ;;  %v630_v57 = vpack.c.bf16 %v73_v50, %v72_v49  ;;  %v42_v59 = vld [vmem:[%s1173_s1 + $0xd0] sm:$0xff]  ;;  %v160_v50 = vsub.s32 5, %v888_v61 }
   0xe   :  { %593 = vmatpush3.bf16.msra.mxu0 %v592_v34  ;;  %v56_v56 = vld [vmem:[%s1173_s1 + $0x140] sm:$0xff]  ;;  %v57_v58 = vld [vmem:[%s1173_s1 + $0x148] sm:$0xff]  ;;  %v43_v60 = vld [vmem:[%s1173_s1 + $0xd8] sm:$0xff]  ;;  %v600_v0 = vpack.c.bf16 %v25_v55, %v24_v54 }
   0xf   :  { %625 = vmatpush3.bf16.msra.mxu1 %v624_v38  ;;  %595 = vmatprep.subr.bf16.mxu0 %v594_v39  ;;  %v74_v62 = vld [vmem:[%s1173_s1 + $0x1d0] sm:$0xff]  ;;  %v75_v63 = vld [vmem:[%s1173_s1 + $0x1d8] sm:$0xff]  ;;  %v632_v1 = vpack.c.bf16 %v57_v58, %v56_v56  ;;  %v602_v2 = vpack.c.bf16 %v43_v60, %v42_v59  ;;  %v44_v8 = vld [vmem:[%s1173_s1 + $0xe0] sm:$0xff]  ;;  %v140_v39 = vsub.s32 0, %v888_v61  ;;  %v740_v60 = vmov 0.0|0.0  }
  0x10   :  { %627 = vmatprep.subr.bf16.mxu1 %v626_v43  ;;  %v26_v3 = vld [vmem:[%s1173_s1 + $0x50] sm:$0xff]  ;;  %v27_v4 = vld [vmem:[%s1173_s1 + $0x58] sm:$0xff]  ;;  %v634_v6 = vpack.c.bf16 %v75_v63, %v74_v62  ;;  %v45_v9 = vld [vmem:[%s1173_s1 + $0xe8] sm:$0xff] }
  0x11   :  { %v58_v5 = vld [vmem:[%s1173_s1 + $0x150] sm:$0xff]  ;;  %v59_v7 = vld [vmem:[%s1173_s1 + $0x158] sm:$0xff]  ;;  %v76_v12 = vld [vmem:[%s1173_s1 + $0x1e0] sm:$0xff]  ;;  %v604_v14 = vpack.c.bf16 %v27_v4, %v26_v3  ;;  %v606_v17 = vpack.c.bf16 %v45_v9, %v44_v8 }
  0x12   :  { %597 = vmatpush3.bf16.msra.mxu0 %v596_v51  ;;  %v77_v13 = vld [vmem:[%s1173_s1 + $0x1e8] sm:$0xff]  ;;  %v28_v15 = vld [vmem:[%s1173_s1 + $0x60] sm:$0xff]  ;;  %v636_v16 = vpack.c.bf16 %v59_v7, %v58_v5  ;;  %v46_v23 = vld [vmem:[%s1173_s1 + $0xf0] sm:$0xff] }
  0x13   :  { %629 = vmatpush3.bf16.msra.mxu1 %v628_v52  ;;  %599 = vmatprep.subr.bf16.mxu0 %v598_v53  ;;  %v29_v18 = vld [vmem:[%s1173_s1 + $0x68] sm:$0xff]  ;;  %v60_v19 = vld [vmem:[%s1173_s1 + $0x160] sm:$0xff]  ;;  %v638_v21 = vpack.c.bf16 %v77_v13, %v76_v12  ;;  %v47_v24 = vld [vmem:[%s1173_s1 + $0xf8] sm:$0xff]  ;;  %v168_v52 = vsub.s32 7, %v888_v61 }
  0x14   :  { %631 = vmatprep.subr.bf16.mxu1 %v630_v57  ;;  %v934_v20 = vld [vmem:[%s1172_s0] sm:$0xff]  ;;  %v61_v22 = vld [vmem:[%s1173_s1 + $0x168] sm:$0xff]  ;;  %v78_v27 = vld [vmem:[%s1173_s1 + $0x1f0] sm:$0xff]  ;;  %v608_v29 = vpack.c.bf16 %v29_v18, %v28_v15  ;;  %v610_v31 = vpack.c.bf16 %v47_v24, %v46_v23 }
  0x15   :  { %v145_v25 = vrot.slane %v934_v20, %v144_v10  ;;  %v153_v26 = vrot.slane %v934_v20, %v152_v11  ;;  %v79_v28 = vld [vmem:[%s1173_s1 + $0x1f8] sm:$0xff]  ;;  %v640_v30 = vpack.c.bf16 %v61_v22, %v60_v19  ;;  %v30_v32 = vld [vmem:[%s1173_s1 + $0x70] sm:$0xff]  ;;  %v96_v37 = vld [vmem:[%s1173_s1 + $0x280] sm:$0xff]  ;;  %v141_v51 = vrot.slane %v934_v20, %v140_v39 }
  0x16   :  { %601 = vmatpush3.bf16.msra.mxu0 %v600_v0  ;;  %v31_v33 = vld [vmem:[%s1173_s1 + $0x78] sm:$0xff]  ;;  %v62_v34 = vld [vmem:[%s1173_s1 + $0x170] sm:$0xff]  ;;  %v642_v35 = vpack.c.bf16 %v79_v28, %v78_v27  ;;  %v97_v38 = vld [vmem:[%s1173_s1 + $0x288] sm:$0xff]  ;;  %v149_v53 = vrot.slane %v934_v20, %v148_v41 }
  0x17   :  { %633 = vmatpush3.bf16.msra.mxu1 %v632_v1  ;;  %603 = vmatprep.subr.bf16.mxu0 %v602_v2  ;;  %v63_v36 = vld [vmem:[%s1173_s1 + $0x178] sm:$0xff]  ;;  %v612_v40 = vpack.c.bf16 %v31_v33, %v30_v32  ;;  %v646_v43 = vpack.c.bf16 %v97_v38, %v96_v37  ;;  %v80_v44 = vld [vmem:[%s1173_s1 + $0x200] sm:$0xff]  ;;  %v81_v45 = vld [vmem:[%s1173_s1 + $0x208] sm:$0xff]  ;;  %v161_v1 = vrot.slane %v934_v20, %v160_v50 }
  0x18   :  { %635 = vmatprep.subr.bf16.mxu1 %v634_v6  ;;  %244 = vmatprep.mubr.f32.mxu0 %v145_v25  ;;  %v644_v42 = vpack.c.bf16 %v63_v36, %v62_v34  ;;  %v112_v46 = vld [vmem:[%s1173_s1 + $0x300] sm:$0xff]  ;;  %v113_v47 = vld [vmem:[%s1173_s1 + $0x308] sm:$0xff]  ;;  %v98_v48 = vld [vmem:[%s1173_s1 + $0x290] sm:$0xff]  ;;  %v648_v54 = vpack.c.bf16 %v81_v45, %v80_v44  ;;  %v169_v2 = vrot.slane %v934_v20, %v168_v52 }
  0x19   :  { %314 = vmatprep.mubr.f32.mxu1 %v153_v26  ;;  %v99_v49 = vld [vmem:[%s1173_s1 + $0x298] sm:$0xff]  ;;  %v679_v55 = vpack.c.bf16 %v113_v47, %v112_v46  ;;  %v82_v57 = vld [vmem:[%s1173_s1 + $0x210] sm:$0xff]  ;;  %v100_v63 = vld [vmem:[%s1173_s1 + $0x2a0] sm:$0xff] }
  0x1a   :  { %605 = vmatpush3.bf16.msra.mxu0 %v604_v14  ;;  %v650_v56 = vpack.c.bf16 %v99_v49, %v98_v48  ;;  %v83_v58 = vld [vmem:[%s1173_s1 + $0x218] sm:$0xff]  ;;  %v114_v59 = vld [vmem:[%s1173_s1 + $0x310] sm:$0xff]  ;;  %v101_v0 = vld [vmem:[%s1173_s1 + $0x2a8] sm:$0xff] }
  0x1b   :  { %637 = vmatpush3.bf16.msra.mxu1 %v636_v16  ;;  %607 = vmatprep.subr.bf16.mxu0 %v606_v17  ;;  %v115_v62 = vld [vmem:[%s1173_s1 + $0x318] sm:$0xff]  ;;  %v652_v3 = vpack.c.bf16 %v83_v58, %v82_v57  ;;  %v654_v5 = vpack.c.bf16 %v101_v0, %v100_v63  ;;  %v84_v6 = vld [vmem:[%s1173_s1 + $0x220] sm:$0xff]  ;;  %v85_v7 = vld [vmem:[%s1173_s1 + $0x228] sm:$0xff] }
  0x1c   :  { %639 = vmatprep.subr.bf16.mxu1 %v638_v21  ;;  %v682_v4 = vpack.c.bf16 %v115_v62, %v114_v59  ;;  %v116_v8 = vld [vmem:[%s1173_s1 + $0x320] sm:$0xff]  ;;  %v117_v9 = vld [vmem:[%s1173_s1 + $0x328] sm:$0xff]  ;;  %v102_v10 = vld [vmem:[%s1173_s1 + $0x2b0] sm:$0xff]  ;;  %v656_v12 = vpack.c.bf16 %v85_v7, %v84_v6 }
  0x1d   :  { %v103_v11 = vld [vmem:[%s1173_s1 + $0x2b8] sm:$0xff] }
  0x1e   :  { %609 = vmatpush3.bf16.msra.mxu0 %v608_v29 }
  0x1f   :  { %641 = vmatpush3.bf16.msra.mxu1 %v640_v30  ;;  %611 = vmatprep.subr.bf16.mxu0 %v610_v31 }
  0x20   :  { %643 = vmatprep.subr.bf16.mxu1 %v642_v35 }
  0x22   :  { %613 = vmatpush3.bf16.msra.mxu0 %v612_v40 }
  0x23   :  { %645 = vmatpush3.bf16.msra.mxu1 %v644_v42  ;;  %647 = vmatprep.subr.bf16.mxu0 %v646_v43 }
  0x24   :  { %678 = vmatprep.subr.bf16.mxu1 %v740_v60 }
  0x25   :  { %245 = vmatmul.mubr.f32.vlgmr.msra.gmra.mrb[0].mxu0 %v141_v51 }
  0x26   :  { %315 = vmatmul.mubr.f32.vlgmr.msra.gmra.mrb[0].mxu1 %v149_v53  ;;  %649 = vmatpush3.bf16.msra.mxu0 %v648_v54 }
  0x27   :  { %680 = vmatpush1.bf16.msra.mxu1 %v679_v55  ;;  %651 = vmatprep.subr.bf16.mxu0 %v650_v56 }
  0x28   :  { %681 = vmatprep.subr.bf16.mxu1 %v740_v60  ;;  %384 = vmatprep.mubr.f32.mxu0 %v161_v1 }
  0x29   :  { %476 = vmatprep.mubr.msk.f32.mxu1 %vm177_vm0, %v169_v2 }
  0x2a   :  { %653 = vmatpush3.bf16.msra.mxu0 %v652_v3 }
  0x2b   :  { %8 = vsyncpa [#allocation3], 0  ;;  %683 = vmatpush1.bf16.msra.mxu1 %v682_v4  ;;  %655 = vmatprep.subr.bf16.mxu0 %v654_v5  ;;  %v685_v13 = vpack.c.bf16 %v117_v9, %v116_v8  ;;  %v658_v14 = vpack.c.bf16 %v103_v11, %v102_v10  ;;  %v86_v15 = vld [vmem:[%s1173_s1 + $0x230] sm:$0xff]  ;;  %v87_v16 = vld [vmem:[%s1173_s1 + $0x238] sm:$0xff]  ;;  %v156_v56 = vsub.s32 4, %v888_v61  ;;  %v164_v9 = vsub.s32 6, %v888_v61 }
  0x2c   :  { %v118_v17 = vld [vmem:[%s1173_s1 + $0x330] sm:$0xff]  ;;  %684 = vmatprep.subr.bf16.mxu1 %v740_v60  ;;  %v119_v18 = vld [vmem:[%s1173_s1 + $0x338] sm:$0xff]  ;;  %v104_v19 = vld [vmem:[%s1173_s1 + $0x2c0] sm:$0xff]  ;;  %v660_v22 = vpack.c.bf16 %v87_v16, %v86_v15  ;;  %vm460_vm1 = vcmask 319488  }
  0x2d   :  { %v105_v21 = vld [vmem:[%s1173_s1 + $0x2c8] sm:$0xff]  ;;  %v688_v23 = vpack.c.bf16 %v119_v18, %v118_v17  ;;  %v88_v25 = vld [vmem:[%s1173_s1 + $0x240] sm:$0xff]  ;;  %v106_v29 = vld [vmem:[%s1173_s1 + $0x2d0] sm:$0xff]  ;;  %v157_v63 = vrot.slane %v934_v20, %v156_v56  ;;  %v165_v11 = vrot.slane %v934_v20, %v164_v9 }
  0x2e   :  { %657 = vmatpush3.bf16.msra.mxu0 %v656_v12  ;;  %v662_v24 = vpack.c.bf16 %v105_v21, %v104_v19  ;;  %v89_v26 = vld [vmem:[%s1173_s1 + $0x248] sm:$0xff]  ;;  %v120_v27 = vld [vmem:[%s1173_s1 + $0x340] sm:$0xff]  ;;  %v107_v30 = vld [vmem:[%s1173_s1 + $0x2d8] sm:$0xff] }
  0x2f   :  { %686 = vmatpush1.bf16.msra.mxu1 %v685_v13  ;;  %659 = vmatprep.subr.bf16.mxu0 %v658_v14  ;;  %v121_v28 = vld [vmem:[%s1173_s1 + $0x348] sm:$0xff]  ;;  %v664_v31 = vpack.c.bf16 %v89_v26, %v88_v25  ;;  %v666_v33 = vpack.c.bf16 %v107_v30, %v106_v29  ;;  %v90_v34 = vld [vmem:[%s1173_s1 + $0x250] sm:$0xff]  ;;  %v91_v35 = vld [vmem:[%s1173_s1 + $0x258] sm:$0xff] }
  0x30   :  { %687 = vmatprep.subr.bf16.mxu1 %v740_v60  ;;  %v691_v32 = vpack.c.bf16 %v121_v28, %v120_v27  ;;  %v122_v36 = vld [vmem:[%s1173_s1 + $0x350] sm:$0xff]  ;;  %v123_v37 = vld [vmem:[%s1173_s1 + $0x358] sm:$0xff]  ;;  %v108_v38 = vld [vmem:[%s1173_s1 + $0x2e0] sm:$0xff]  ;;  %v668_v40 = vpack.c.bf16 %v91_v35, %v90_v34 }
  0x31   :  { %v109_v39 = vld [vmem:[%s1173_s1 + $0x2e8] sm:$0xff]  ;;  %v694_v41 = vpack.c.bf16 %v123_v37, %v122_v36  ;;  %v92_v43 = vld [vmem:[%s1173_s1 + $0x260] sm:$0xff]  ;;  %v110_v47 = vld [vmem:[%s1173_s1 + $0x2f0] sm:$0xff] }
  0x32   :  { %661 = vmatpush3.bf16.msra.mxu0 %v660_v22  ;;  %v670_v42 = vpack.c.bf16 %v109_v39, %v108_v38  ;;  %v93_v44 = vld [vmem:[%s1173_s1 + $0x268] sm:$0xff]  ;;  %v124_v45 = vld [vmem:[%s1173_s1 + $0x360] sm:$0xff]  ;;  %v111_v48 = vld [vmem:[%s1173_s1 + $0x2f8] sm:$0xff] }
  0x33   :  { %689 = vmatpush1.bf16.msra.mxu1 %v688_v23  ;;  %663 = vmatprep.subr.bf16.mxu0 %v662_v24  ;;  %v125_v46 = vld [vmem:[%s1173_s1 + $0x368] sm:$0xff]  ;;  %v672_v49 = vpack.c.bf16 %v93_v44, %v92_v43  ;;  %v674_v51 = vpack.c.bf16 %v111_v48, %v110_v47  ;;  %v94_v52 = vld [vmem:[%s1173_s1 + $0x270] sm:$0xff]  ;;  %v95_v53 = vld [vmem:[%s1173_s1 + $0x278] sm:$0xff] }
  0x34   :  { %690 = vmatprep.subr.bf16.mxu1 %v740_v60  ;;  %v697_v50 = vpack.c.bf16 %v125_v46, %v124_v45  ;;  %v126_v54 = vld [vmem:[%s1173_s1 + $0x370] sm:$0xff]  ;;  %v127_v55 = vld [vmem:[%s1173_s1 + $0x378] sm:$0xff]  ;;  %v676_v57 = vpack.c.bf16 %v95_v53, %v94_v52  ;;  %v128_v59 = vld [vmem:[%s1173_s1 + $0x380] sm:$0xff] }
  0x35   :  { %v700_v58 = vpack.c.bf16 %v127_v55, %v126_v54  ;;  %v129_v62 = vld [vmem:[%s1173_s1 + $0x388] sm:$0xff]  ;;  %v130_v1 = vld [vmem:[%s1173_s1 + $0x390] sm:$0xff]  ;;  %v131_v2 = vld [vmem:[%s1173_s1 + $0x398] sm:$0xff] }
  0x36   :  { %665 = vmatpush3.bf16.msra.mxu0 %v664_v31  ;;  %v703_v0 = vpack.c.bf16 %v129_v62, %v128_v59  ;;  %v706_v3 = vpack.c.bf16 %v131_v2, %v130_v1  ;;  %v132_v4 = vld [vmem:[%s1173_s1 + $0x3a0] sm:$0xff]  ;;  %v133_v5 = vld [vmem:[%s1173_s1 + $0x3a8] sm:$0xff]  ;;  %v134_v7 = vld [vmem:[%s1173_s1 + $0x3b0] sm:$0xff] }
  0x37   :  { %692 = vmatpush1.bf16.msra.mxu1 %v691_v32  ;;  %667 = vmatprep.subr.bf16.mxu0 %v666_v33  ;;  %v709_v6 = vpack.c.bf16 %v133_v5, %v132_v4  ;;  %v135_v8 = vld [vmem:[%s1173_s1 + $0x3b8] sm:$0xff]  ;;  %v136_v14 = vld [vmem:[%s1174_s2] sm:$0x1]  ;;  %s741_s1 = smov [#allocation2]  }
  0x38   :  { %693 = vmatprep.subr.bf16.mxu1 %v740_v60  ;;  %v712_v10 = vpack.c.bf16 %v135_v8, %v134_v7  ;;  %s468_s8 = sshll.u32 %s741_s1, 4  ;;  %s469_s8 = int_to_ptr.vmem [resolvable:$true] %s468_s8 }
  0x39   :  { %s716_s9 = scalar_lea.vmem %s469_s8, 16  ;;  %s720_s2 = scalar_lea.vmem %s469_s8, 32 }
  0x3a   :  { %669 = vmatpush3.bf16.msra.mxu0 %v668_v40  ;;  %p717_p0 = scmp.ne.s32.totalorder %s469_s8, %s716_s9  ;;  %p721_p1 = scmp.lt.s32.totalorder %s469_s8, %s469_s8 }
  0x3b   :  { %695 = vmatpush1.bf16.msra.mxu1 %v694_v41  ;;  %671 = vmatprep.subr.bf16.mxu0 %v670_v42  ;;  %p722_p2 = scmp.lt.s32.totalorder %s720_s2, %s716_s9 }
  0x3c   :  { %696 = vmatprep.subr.bf16.mxu1 %v740_v60 }
  0x3d   :  { %p723_p3 = por %p722_p2, %p721_p1 }
  0x3e   :  { %673 = vmatpush3.bf16.msra.mxu0 %v672_v49 }
  0x3f   :  { %698 = vmatpush1.bf16.msra.mxu1 %v697_v50  ;;  %675 = vmatprep.subr.bf16.mxu0 %v674_v51  ;;  %p724_p4 = pnand %p723_p3, %p717_p0 }
  0x40   :  { %699 = vmatprep.subr.bf16.mxu1 %v740_v60 }
  0x42   :  { %677 = vmatpush3.bf16.msra.mxu0 %v676_v57 }
  0x43   :  { %701 = vmatpush1.bf16.msra.mxu1 %v700_v58 }
  0x44   :  { %702 = vmatprep.subr.bf16.mxu1 %v740_v60 }
  0x45   :  { %385 = vmatmul.mubr.f32.vlgmr.msra.gmra.mrb[2].mxu0 %v157_v63 }
  0x47   :  { %704 = vmatpush1.bf16.msra.mxu1 %v703_v0 }
  0x48   :  { %705 = vmatprep.subr.bf16.mxu1 %v740_v60 }
  0x4b   :  { %707 = vmatpush1.bf16.msra.mxu1 %v706_v3 }
  0x4c   :  { %708 = vmatprep.subr.bf16.mxu1 %v740_v60 }
  0x4f   :  { %710 = vmatpush1.bf16.msra.mxu1 %v709_v6 }
  0x50   :  { %711 = vmatprep.subr.bf16.mxu1 %v740_v60 }
  0x53   :  { %713 = vmatpush1.bf16.msra.mxu1 %v712_v10 }
  0x56   :  { %455 = vmatmul.mubr.f32.vlgmr.msra.gmra.mrb[2].mxu1 %v165_v11 }
  0xf8   :  { %v509_v12 = vpop.f32.mrb[0].mxu0 }
  0xf9   :  { %v544_v13 = vpop.f32.mrb[0].mxu1  ;;  %v510_v15 = vpop.f32.mrb[1].mxu0 }
  0xfa   :  { %v511_v16 = vadd.f32 %v510_v15, %v509_v12  ;;  %v545_v17 = vpop.f32.mrb[1].mxu1 }
  0xfb   :  { %v546_v18 = vadd.f32 %v545_v17, %v544_v13 }
  0xfc   :  { %v247_v19 = vadd.f32 %v511_v16, %v136_v14 }
  0xfe   :  { %v317_v61 = vadd.f32 %v546_v18, %v247_v19 }
 0x118   :  { %v579_v21 = vpop.f32.mrb[2].mxu0 }
 0x119   :  { %v580_v22 = vpop.f32.mrb[3].mxu0 }
 0x11a   :  { %v581_v23 = vadd.f32 %v580_v22, %v579_v21 }
 0x11c   :  { %v387_v60 = vadd.f32 %v581_v23, %v317_v61 }
 0x129   :  { %v456_v20 = vpop.f32.mrb[2].mxu1 }
 0x12a   :  { %v457_v24 = vadd.f32 %v456_v20, %v387_v60  ;;  %v458_v25 = vpop.f32.mrb[3].mxu1 }
 0x12c   :  { %461 = vst.msk [vmem:[#allocation2] sm:$0x1] %vm460_vm1, %v457_v24 }
 0x12d   :  { %727 = shalt.err (!%p724_p4)
}
 0x12e   :  { %s728_s12 = scalar_lea.hbm %s1175_s3, 16 }
 0x12f   :  { %p729_p5 = scmp.ne.s32.totalorder %s1175_s3, %s728_s12  ;;  %p732_p6 = scmp.lt.u32.totalorder %s728_s12, %s1175_s3 }
 0x131   :  { %p734_p7 = pnand %p732_p6, %p729_p5 }
 0x133   :  { %737 = shalt.err (!%p734_p7)
}
 0x134   :  { %471 = dma.vmem_to_hbm [thread:$0]  %s469_s8, 16, %s1175_s3, [#allocation3]  }
 0x135   :  { %738 = dma.done.wait [#allocation3], 16  }
 0x136   :  { %739 = vsyncadd [#allocation3], 4294967280 }
 0x137   :  { %475 = vsyncpa [#allocation3], 1 }

</bundles_post_ra>
